<compile_context>
chip_gen: v6e
topology: v6e:2x2x1
jax: 0.10.0
libtpu: 0.0.40
codegen_flags: <defaults>
</compile_context>

<pallas_src>
import functools

import jax
import jax.numpy as jnp
from jax import lax
from jax.experimental import pallas as pl
from jax.experimental.pallas import tpu as pltpu

_NEG_BIG = -1e30  # additive mask value (exp underflows to exactly 0)


def _attn_kernel(q_ref, k_ref, v_ref, bias_ref, o_ref, m_sc, l_sc, acc_sc, *, scale):
    """Fused scaled-dot-product attention with online (flash) softmax.

    Shapes per grid step:
      q_ref:    (bh_tile, q_tile, dh)
      k_ref:    (bh_tile, k_tile, dh)
      v_ref:    (bh_tile, k_tile, dh)
      bias_ref: (bh_tile, 1, k_tile)   additive key mask (0 or -1e30)
      o_ref:    (bh_tile, q_tile, dh)
    Scratch (VMEM, persists across the kv grid axis):
      m_sc: (bh_tile, q_tile, 1)  running max
      l_sc: (bh_tile, q_tile, 1)  running denominator
      acc_sc: (bh_tile, q_tile, dh) running numerator
    """
    kv = pl.program_id(2)

    @pl.when(kv == 0)
    def _init():
        m_sc[...] = jnp.full(m_sc.shape, -jnp.inf, dtype=jnp.float32)
        l_sc[...] = jnp.zeros(l_sc.shape, dtype=jnp.float32)
        acc_sc[...] = jnp.zeros(acc_sc.shape, dtype=jnp.float32)

    q = q_ref[...].astype(jnp.float32)
    k = k_ref[...].astype(jnp.float32)
    v = v_ref[...].astype(jnp.float32)

    # sim = q @ k^T * scale  (+ additive mask), batched over the head-batch dim.
    s = jnp.einsum("bqd,bkd->bqk", q, k, preferred_element_type=jnp.float32)
    s = s * scale + bias_ref[...].astype(jnp.float32)

    m_prev = m_sc[...]
    m_new = jnp.maximum(m_prev, s.max(axis=-1, keepdims=True))
    alpha = jnp.exp(m_prev - m_new)
    p = jnp.exp(s - m_new)

    l_sc[...] = alpha * l_sc[...] + p.sum(axis=-1, keepdims=True)
    acc_sc[...] = alpha * acc_sc[...] + jnp.einsum(
        "bqk,bkd->bqd", p, v, preferred_element_type=jnp.float32
    )
    m_sc[...] = m_new

    @pl.when(kv == pl.num_programs(2) - 1)
    def _finalize():
        o_ref[...] = (acc_sc[...] / l_sc[...]).astype(o_ref.dtype)


def attention_core_pallas(q, k, v, bias, scale, *, bh_tile=None, q_tile=None, k_tile=None):
    """q,k,v: (B*H, N, dh); bias: (B*H, 1, Nk) additive. Returns (B*H, Nq, dh)."""
    BH, Nq, Dh = q.shape
    Nk = k.shape[1]

    # Tile choices: use full extents for small problems (single grid step,
    # large lane-dense blocks); cap so the working set stays far below the
    # v7x 32 MiB scoped-VMEM default even with double-buffering.
    bh_tile = BH if bh_tile is None else bh_tile
    q_tile = Nq if q_tile is None else q_tile
    k_tile = Nk if k_tile is None else k_tile
    assert BH % bh_tile == 0 and Nq % q_tile == 0 and Nk % k_tile == 0, (
        "tile sizes must divide (B*H, Nq, Nk) exactly (no wrapper-side padding)"
    )

    grid = (BH // bh_tile, Nq // q_tile, Nk // k_tile)
    kernel = functools.partial(_attn_kernel, scale=float(scale))

    return pl.pallas_call(
        kernel,
        out_shape=jax.ShapeDtypeStruct((BH, Nq, Dh), q.dtype),
        grid_spec=pltpu.PrefetchScalarGridSpec(
            num_scalar_prefetch=0,
            grid=grid,
            in_specs=[
                pl.BlockSpec((bh_tile, q_tile, Dh), lambda b, i, j: (b, i, 0)),
                pl.BlockSpec((bh_tile, k_tile, Dh), lambda b, i, j: (b, j, 0)),
                pl.BlockSpec((bh_tile, k_tile, Dh), lambda b, i, j: (b, j, 0)),
                pl.BlockSpec((bh_tile, 1, k_tile), lambda b, i, j: (b, 0, j)),
            ],
            out_specs=pl.BlockSpec((bh_tile, q_tile, Dh), lambda b, i, j: (b, i, 0)),
            scratch_shapes=[
                pltpu.VMEM((bh_tile, q_tile, 1), jnp.float32),
                pltpu.VMEM((bh_tile, q_tile, 1), jnp.float32),
                pltpu.VMEM((bh_tile, q_tile, Dh), jnp.float32),
            ],
        ),
        compiler_params=pltpu.CompilerParams(
            dimension_semantics=("parallel", "parallel", "arbitrary"),
        ),
    )(q, k, v, bias)


class AttentionPallas:
    """JAX/Pallas port of Attention(query_dim, context_dim, heads, dim_head, dropout)."""

    def __init__(self, query_dim, context_dim=None, heads=8, dim_head=64,
                 dropout=0.0, key=None):
        inner_dim = dim_head * heads
        context_dim = query_dim if context_dim is None else context_dim
        self.scale = dim_head ** (-0.5)
        self.heads = heads
        self.dim_head = dim_head
        self.dropout_p = dropout  # TODO(synk): training-mode attention-weight dropout
                                  # (identity at p=0 / eval, matching inference).
        key = jax.random.PRNGKey(0) if key is None else key
        k1, k2, k3 = jax.random.split(key, 3)

        def _init(k, fan_in, shape):
            bound = 1.0 / (fan_in ** 0.5)  # nn.Linear default init range
            return jax.random.uniform(k, shape, jnp.float32, -bound, bound)

        self.w_q = _init(k1, query_dim, (query_dim, inner_dim))        # to_q (no bias)
        self.w_kv = _init(k2, context_dim, (context_dim, 2 * inner_dim))  # to_kv (no bias)
        self.w_out = _init(k3, inner_dim, (inner_dim, query_dim))      # to_out
        self.b_out = jnp.zeros((query_dim,), jnp.float32)

    def __call__(self, x, context=None, mask=None):
        B, Nq, _ = x.shape
        h, dh = self.heads, self.dim_head
        context = x if context is None else context
        Nk = context.shape[1]

        # Projections (plain XLA GEMMs).
        q = jnp.einsum("bnd,de->bne", x, self.w_q)
        kv = jnp.einsum("bmd,de->bme", context, self.w_kv)
        k, v = jnp.split(kv, 2, axis=-1)

        def to_bh(t, n):  # 'b n (h d) -> (b h) n d'
            return t.reshape(B, n, h, dh).transpose(0, 2, 1, 3).reshape(B * h, n, dh)

        q, k, v = to_bh(q, Nq), to_bh(k, Nk), to_bh(v, Nk)

        if mask is not None:
            m = mask.reshape(B, -1)  # 'b ... -> b (...)'
            bias = jnp.where(m, 0.0, _NEG_BIG).astype(jnp.float32)
            bias = jnp.broadcast_to(bias[:, None, None, :], (B, h, 1, Nk))
            bias = bias.reshape(B * h, 1, Nk)
        else:
            bias = jnp.zeros((B * h, 1, Nk), jnp.float32)

        # Fused attention core (Pallas).
        o = attention_core_pallas(q, k, v, bias, self.scale)  # (B*h, Nq, dh)

        # '(b h) n d -> b n (h d)'
        o = o.reshape(B, h, Nq, dh).transpose(0, 2, 1, 3).reshape(B, Nq, h * dh)
        return jnp.einsum("bne,ef->bnf", o, self.w_out) + self.b_out


def _reference_forward(attn, x, context=None, mask=None):
    """Pure-JAX reference with identical math (additive mask, same weights)."""
    h, dh = attn.heads, attn.dim_head
    B, Nq, _ = x.shape
    context = x if context is None else context
    q = jnp.einsum("bnd,de->bne", x, attn.w_q)
    kv = jnp.einsum("bmd,de->bme", context, attn.w_kv)
    k, v = jnp.split(kv, 2, axis=-1)

    def split_heads(t):
        b, n, _ = t.shape
        return t.reshape(b, n, h, dh).transpose(0, 2, 1, 3)  # (B, h, n, dh)

    qh, kh, vh = map(split_heads, (q, k, v))
    sim = jnp.einsum("bhid,bhjd->bhij", qh, kh,
                     precision=lax.Precision.HIGHEST) * attn.scale
    if mask is not None:
        m = mask.reshape(mask.shape[0], -1)
        sim = sim + jnp.where(m, 0.0, _NEG_BIG)[:, None, None, :]
    a = jax.nn.softmax(sim, axis=-1)
    o = jnp.einsum("bhij,bhjd->bhid", a, vh, precision=lax.Precision.HIGHEST)
    o = o.transpose(0, 2, 1, 3).reshape(B, Nq, h * dh)
    return jnp.einsum("bne,ef->bnf", o, attn.w_out) + attn.b_out


if __name__ == "__main__":
    key = jax.random.PRNGKey(0)
    kx, kc, kp, kp2 = jax.random.split(key, 4)

    # Small shapes consistent with the module: batch=2, query seq=8, query_dim=32,
    # context seq=16, context_dim=16, heads=2, dim_head=128 (lane-dense head dim).
    B, Nq, Dq = 2, 8, 32
    Nk, Dc = 16, 16
    heads, dim_head = 2, 128

    x = jax.random.normal(kx, (B, Nq, Dq), dtype=jnp.float32)
    ctx = jax.random.normal(kc, (B, Nk, Dc), dtype=jnp.float32)

    attn = AttentionPallas(Dq, context_dim=Dc, heads=heads, dim_head=dim_head, key=kp)

    # 1) cross-attention, no mask
    out = jax.block_until_ready(attn(x, context=ctx))
    ref = _reference_forward(attn, x, context=ctx)
    assert jnp.allclose(out, ref, atol=1e-2, rtol=1e-2), "cross-attention mismatch"

    # 2) cross-attention with a key mask (no fully-masked rows)
    mask = jnp.arange(Nk)[None, :] < jnp.array([Nk, Nk - 6])[:, None]  # (B, Nk) bool
    out_m = jax.block_until_ready(attn(x, context=ctx, mask=mask))
    ref_m = _reference_forward(attn, x, context=ctx, mask=mask)
    assert jnp.allclose(out_m, ref_m, atol=1e-2, rtol=1e-2), "masked attention mismatch"

    # 3) self-attention with module-default heads/dim_head (context defaults to x)
    attn_self = AttentionPallas(Dq, key=kp2)  # heads=8, dim_head=64
    out_s = jax.block_until_ready(attn_self(x))
    ref_s = _reference_forward(attn_self, x)
    assert jnp.allclose(out_s, ref_s, atol=1e-2, rtol=1e-2), "self-attention mismatch"

    print("KERNEL_OK")
</pallas_src>

<mosaic_0001>
module attributes {stable_mosaic.version = 11 : i64} {
  func.func @_attn_kernel(%arg0: i32, %arg1: i32, %arg2: i32, %arg3: memref<4x8x128xf32, #tpu.memory_space<vmem>>, %arg4: memref<4x16x128xf32, #tpu.memory_space<vmem>>, %arg5: memref<4x16x128xf32, #tpu.memory_space<vmem>>, %arg6: memref<4x1x16xf32, #tpu.memory_space<vmem>>, %arg7: memref<4x8x128xf32, #tpu.memory_space<vmem>>, %arg8: memref<4x8x1xf32, #tpu.memory_space<vmem>>, %arg9: memref<4x8x1xf32, #tpu.memory_space<vmem>>, %arg10: memref<4x8x128xf32, #tpu.memory_space<vmem>>) attributes {dimension_semantics = [#tpu.dimension_semantics<parallel>, #tpu.dimension_semantics<parallel>, #tpu.dimension_semantics<arbitrary>], iteration_bounds = array<i64: 1, 1, 1>, scalar_prefetch = 0 : i64, scratch_operands = 3 : i64, tpu.core_type = #tpu.core_type<tc>, window_params = [{transform_indices = @transform_0, window_bounds = array<i64: 4, 8, 128>}, {transform_indices = @transform_1, window_bounds = array<i64: 4, 16, 128>}, {transform_indices = @transform_2, window_bounds = array<i64: 4, 16, 128>}, {transform_indices = @transform_3, window_bounds = array<i64: 4, 1, 16>}, {transform_indices = @transform_4, window_bounds = array<i64: 4, 8, 128>}]} {
    %c0_i32 = arith.constant 0 : i32
    %0 = arith.cmpi eq, %arg2, %c0_i32 : i32
    %1 = arith.extui %0 : i1 to i32
    %c0_i32_0 = arith.constant 0 : i32
    %2 = arith.cmpi ne, %1, %c0_i32_0 : i32
    scf.if %2 {
      %cst_36 = arith.constant 0xFF800000 : f32
      %37 = vector.broadcast %cst_36 : f32 to vector<4x8x1xf32>
      %c0_37 = arith.constant 0 : index
      %c0_38 = arith.constant 0 : index
      %c0_39 = arith.constant 0 : index
      %38 = vector.load %arg8[%c0_37, %c0_38, %c0_39] : memref<4x8x1xf32, #tpu.memory_space<vmem>>, vector<4x8x1xf32>
      tpu.vector_store %arg8[%c0_37, %c0_38, %c0_39], %37 {strides = array<i32>} : memref<4x8x1xf32, #tpu.memory_space<vmem>>, vector<4x8x1xf32>,
      %cst_40 = arith.constant 0.000000e+00 : f32
      %39 = vector.broadcast %cst_40 : f32 to vector<4x8x1xf32>
      %c0_41 = arith.constant 0 : index
      %c0_42 = arith.constant 0 : index
      %c0_43 = arith.constant 0 : index
      %40 = vector.load %arg9[%c0_41, %c0_42, %c0_43] : memref<4x8x1xf32, #tpu.memory_space<vmem>>, vector<4x8x1xf32>
      tpu.vector_store %arg9[%c0_41, %c0_42, %c0_43], %39 {strides = array<i32>} : memref<4x8x1xf32, #tpu.memory_space<vmem>>, vector<4x8x1xf32>,
      %cst_44 = arith.constant 0.000000e+00 : f32
      %41 = vector.broadcast %cst_44 : f32 to vector<4x8x128xf32>
      %c0_45 = arith.constant 0 : index
      %c0_46 = arith.constant 0 : index
      %c0_47 = arith.constant 0 : index
      %42 = vector.load %arg10[%c0_45, %c0_46, %c0_47] : memref<4x8x128xf32, #tpu.memory_space<vmem>>, vector<4x8x128xf32>
      tpu.vector_store %arg10[%c0_45, %c0_46, %c0_47], %41 {strides = array<i32>} : memref<4x8x128xf32, #tpu.memory_space<vmem>>, vector<4x8x128xf32>,
    } else {
    }
    %c0 = arith.constant 0 : index
    %c0_1 = arith.constant 0 : index
    %c0_2 = arith.constant 0 : index
    %3 = vector.load %arg3[%c0, %c0_1, %c0_2] : memref<4x8x128xf32, #tpu.memory_space<vmem>>, vector<4x8x128xf32>
    %c0_3 = arith.constant 0 : index
    %c0_4 = arith.constant 0 : index
    %c0_5 = arith.constant 0 : index
    %4 = vector.load %arg4[%c0_3, %c0_4, %c0_5] : memref<4x16x128xf32, #tpu.memory_space<vmem>>, vector<4x16x128xf32>
    %c0_6 = arith.constant 0 : index
    %c0_7 = arith.constant 0 : index
    %c0_8 = arith.constant 0 : index
    %5 = vector.load %arg5[%c0_6, %c0_7, %c0_8] : memref<4x16x128xf32, #tpu.memory_space<vmem>>, vector<4x16x128xf32>
    "tpu.trace_start"() <{level = 10 : i32, message = "bqd,bkd->bqk"}> : () -> ()
    %cst = arith.constant dense<0.000000e+00> : vector<4x8x16xf32>
    %6 = tpu.matmul %3, %4, %cst {dimension_numbers = #tpu.dot_dimension_numbers<[2], [2], [1], [1], [0, 0, 0, 1, 1, 1], [0], [0]>} : vector<4x8x128xf32>, vector<4x16x128xf32>, vector<4x8x16xf32> -> vector<4x8x16xf32>
    "tpu.trace_stop"() : () -> ()
    %cst_9 = arith.constant 0.0883883461 : f32
    %7 = vector.broadcast %cst_9 : f32 to vector<4x8x16xf32>
    %8 = arith.mulf %6, %7 : vector<4x8x16xf32>
    %c0_10 = arith.constant 0 : index
    %c0_11 = arith.constant 0 : index
    %c0_12 = arith.constant 0 : index
    %9 = vector.load %arg6[%c0_10, %c0_11, %c0_12] : memref<4x1x16xf32, #tpu.memory_space<vmem>>, vector<4x1x16xf32>
    %10 = vector.broadcast %9 : vector<4x1x16xf32> to vector<4x8x16xf32>
    %11 = arith.addf %8, %10 : vector<4x8x16xf32>
    %c0_13 = arith.constant 0 : index
    %c0_14 = arith.constant 0 : index
    %c0_15 = arith.constant 0 : index
    %12 = vector.load %arg8[%c0_13, %c0_14, %c0_15] : memref<4x8x1xf32, #tpu.memory_space<vmem>>, vector<4x8x1xf32>
    %cst_16 = arith.constant dense<0xFF800000> : vector<4x8xf32>
    %13 = vector.multi_reduction <maximumf>, %11, %cst_16 [2] : vector<4x8x16xf32> to vector<4x8xf32>
    %14 = vector.shape_cast %13 : vector<4x8xf32> to vector<4x8x1xf32>
    %15 = arith.maximumf %12, %14 : vector<4x8x1xf32>
    %16 = arith.subf %12, %15 : vector<4x8x1xf32>
    %17 = math.exp %16 : vector<4x8x1xf32>
    %18 = vector.broadcast %15 : vector<4x8x1xf32> to vector<4x8x16xf32>
    %19 = arith.subf %11, %18 : vector<4x8x16xf32>
    %20 = math.exp %19 : vector<4x8x16xf32>
    %c0_17 = arith.constant 0 : index
    %c0_18 = arith.constant 0 : index
    %c0_19 = arith.constant 0 : index
    %21 = vector.load %arg9[%c0_17, %c0_18, %c0_19] : memref<4x8x1xf32, #tpu.memory_space<vmem>>, vector<4x8x1xf32>
    %22 = arith.mulf %17, %21 : vector<4x8x1xf32>
    %cst_20 = arith.constant dense<0.000000e+00> : vector<4x8xf32>
    %23 = vector.multi_reduction <add>, %20, %cst_20 [2] : vector<4x8x16xf32> to vector<4x8xf32>
    %24 = vector.shape_cast %23 : vector<4x8xf32> to vector<4x8x1xf32>
    %25 = arith.addf %22, %24 : vector<4x8x1xf32>
    %c0_21 = arith.constant 0 : index
    %c0_22 = arith.constant 0 : index
    %c0_23 = arith.constant 0 : index
    %26 = vector.load %arg9[%c0_21, %c0_22, %c0_23] : memref<4x8x1xf32, #tpu.memory_space<vmem>>, vector<4x8x1xf32>
    tpu.vector_store %arg9[%c0_21, %c0_22, %c0_23], %25 {strides = array<i32>} : memref<4x8x1xf32, #tpu.memory_space<vmem>>, vector<4x8x1xf32>,
    %c0_24 = arith.constant 0 : index
    %c0_25 = arith.constant 0 : index
    %c0_26 = arith.constant 0 : index
    %27 = vector.load %arg10[%c0_24, %c0_25, %c0_26] : memref<4x8x128xf32, #tpu.memory_space<vmem>>, vector<4x8x128xf32>
    %28 = vector.broadcast %17 : vector<4x8x1xf32> to vector<4x8x128xf32>
    %29 = arith.mulf %28, %27 : vector<4x8x128xf32>
    "tpu.trace_start"() <{level = 10 : i32, message = "bqk,bkd->bqd"}> : () -> ()
    %cst_27 = arith.constant dense<0.000000e+00> : vector<4x8x128xf32>
    %30 = tpu.matmul %20, %5, %cst_27 {dimension_numbers = #tpu.dot_dimension_numbers<[2], [1], [1], [2], [0, 0, 0, 1, 1, 2], [0], [0]>} : vector<4x8x16xf32>, vector<4x16x128xf32>, vector<4x8x128xf32> -> vector<4x8x128xf32>
    "tpu.trace_stop"() : () -> ()
    %31 = arith.addf %29, %30 : vector<4x8x128xf32>
    %c0_28 = arith.constant 0 : index
    %c0_29 = arith.constant 0 : index
    %c0_30 = arith.constant 0 : index
    %32 = vector.load %arg10[%c0_28, %c0_29, %c0_30] : memref<4x8x128xf32, #tpu.memory_space<vmem>>, vector<4x8x128xf32>
    tpu.vector_store %arg10[%c0_28, %c0_29, %c0_30], %31 {strides = array<i32>} : memref<4x8x128xf32, #tpu.memory_space<vmem>>, vector<4x8x128xf32>,
    %c0_31 = arith.constant 0 : index
    %c0_32 = arith.constant 0 : index
    %c0_33 = arith.constant 0 : index
    %33 = vector.load %arg8[%c0_31, %c0_32, %c0_33] : memref<4x8x1xf32, #tpu.memory_space<vmem>>, vector<4x8x1xf32>
    tpu.vector_store %arg8[%c0_31, %c0_32, %c0_33], %15 {strides = array<i32>} : memref<4x8x1xf32, #tpu.memory_space<vmem>>, vector<4x8x1xf32>,
    %c0_i32_34 = arith.constant 0 : i32
    %34 = arith.cmpi eq, %arg2, %c0_i32_34 : i32
    %35 = arith.extui %34 : i1 to i32
    %c0_i32_35 = arith.constant 0 : i32
    %36 = arith.cmpi ne, %35, %c0_i32_35 : i32
    scf.if %36 {
      %c0_36 = arith.constant 0 : index
      %c0_37 = arith.constant 0 : index
      %c0_38 = arith.constant 0 : index
      %37 = vector.load %arg10[%c0_36, %c0_37, %c0_38] : memref<4x8x128xf32, #tpu.memory_space<vmem>>, vector<4x8x128xf32>
      %c0_39 = arith.constant 0 : index
      %c0_40 = arith.constant 0 : index
      %c0_41 = arith.constant 0 : index
      %38 = vector.load %arg9[%c0_39, %c0_40, %c0_41] : memref<4x8x1xf32, #tpu.memory_space<vmem>>, vector<4x8x1xf32>
      %39 = vector.broadcast %38 : vector<4x8x1xf32> to vector<4x8x128xf32>
      %40 = arith.divf %37, %39 : vector<4x8x128xf32>
      %c0_42 = arith.constant 0 : index
      %c0_43 = arith.constant 0 : index
      %c0_44 = arith.constant 0 : index
      %41 = vector.load %arg7[%c0_42, %c0_43, %c0_44] : memref<4x8x128xf32, #tpu.memory_space<vmem>>, vector<4x8x128xf32>
      tpu.vector_store %arg7[%c0_42, %c0_43, %c0_44], %40 {strides = array<i32>} : memref<4x8x128xf32, #tpu.memory_space<vmem>>, vector<4x8x128xf32>,
    } else {
    }
    return
  }
  func.func @transform_0(%arg0: i32, %arg1: i32, %arg2: i32) -> (i32, i32, i32) {
    %c0_i32 = arith.constant 0 : i32
    %c0_i32_0 = arith.constant 0 : i32
    return %arg0, %arg1, %c0_i32 : i32, i32, i32
  }
  func.func @transform_1(%arg0: i32, %arg1: i32, %arg2: i32) -> (i32, i32, i32) {
    %c0_i32 = arith.constant 0 : i32
    %c0_i32_0 = arith.constant 0 : i32
    return %arg0, %arg2, %c0_i32 : i32, i32, i32
  }
  func.func @transform_2(%arg0: i32, %arg1: i32, %arg2: i32) -> (i32, i32, i32) {
    %c0_i32 = arith.constant 0 : i32
    %c0_i32_0 = arith.constant 0 : i32
    return %arg0, %arg2, %c0_i32 : i32, i32, i32
  }
  func.func @transform_3(%arg0: i32, %arg1: i32, %arg2: i32) -> (i32, i32, i32) {
    %c0_i32 = arith.constant 0 : i32
    %c0_i32_0 = arith.constant 0 : i32
    return %arg0, %c0_i32, %arg2 : i32, i32, i32
  }
  func.func @transform_4(%arg0: i32, %arg1: i32, %arg2: i32) -> (i32, i32, i32) {
    %c0_i32 = arith.constant 0 : i32
    %c0_i32_0 = arith.constant 0 : i32
    return %arg0, %arg1, %c0_i32 : i32, i32, i32
  }
}

</mosaic_0001>

<bundles_post_ra>
// kernel: tpu_custom_call.1
= control target key start
LH: loop header
LB: loop body
LE: loop exit
PB: predicated region body
PF: predicated region fallthrough
CT: control target
= control target key end

     0   :  { %9 = vsyncpa [#allocation6], 0  ;;  %s1293_s0 = inlined_call_operand.hbm [shape: f32[4,8,128], index: 0, kind: input, shape index: {}]   ;;  %s1294_s1 = inlined_call_operand.hbm [shape: f32[4,16,128], index: 1, kind: input, shape index: {}]   ;;  %s1295_s2 = inlined_call_operand.hbm [shape: f32[4,16,128], index: 2, kind: input, shape index: {}]   ;;  %s1296_s3 = inlined_call_operand.vmem [shape: f32[4,1,16], index: 3, kind: input, shape index: {}]   ;;  %s1297_s4 = inlined_call_operand.hbm [shape: f32[4,8,128], index: 4, kind: output, shape index: {}]  }
   0x1   :  { %10 = vsyncpa [#allocation9], 0 }
   0x2   :  { %11 = vsyncpa [#allocation7], 0  ;;  %s1109_s15 = smov [#allocation8]   ;;  %s1110_s17 = smov [#allocation5]  }
   0x3   :  { %s29_s16 = sshll.u32 %s1109_s15, 4  ;;  %s17_s18 = sshll.u32 %s1110_s17, 4  ;;  %s30_s16 = int_to_ptr.vmem [resolvable:$true] %s29_s16  ;;  %s18_s18 = int_to_ptr.vmem [resolvable:$true] %s17_s18 }
   0x4   :  { %s1031_s19 = scalar_lea.vmem %s30_s16, 1024  ;;  %p1036_p1 = scmp.lt.s32.totalorder %s30_s16, %s30_s16 }
   0x5   :  { %p1032_p0 = scmp.ne.s32.totalorder %s30_s16, %s1031_s19  ;;  %p1037_p2 = scmp.lt.s32.totalorder %s1031_s19, %s1031_s19 }
   0x7   :  { %p1038_p3 = por %p1037_p2, %p1036_p1 }
   0x9   :  { %p1039_p4 = pnand %p1038_p3, %p1032_p0 }
   0xb   :  { %1042 = shalt.err (!%p1039_p4)
}
   0xc   :  { %s1111_s20 = smov 128   ;;  %s1112_s21 = smov 8  }
   0xd   :  { %35 = dma.hbm_to_vmem [thread:$0]  %s1294_s1, 1024, %s30_s16, [#allocation9], %s1111_s20, %s1111_s20, %s1112_s21  }
   0xe   :  { %s1051_s24 = scalar_lea.vmem %s18_s18, 512  ;;  %p1056_p6 = scmp.lt.s32.totalorder %s18_s18, %s18_s18 }
   0xf   :  { %p1052_p5 = scmp.ne.s32.totalorder %s18_s18, %s1051_s24  ;;  %p1057_p7 = scmp.lt.s32.totalorder %s1051_s24, %s1051_s24 }
  0x11   :  { %p1058_p8 = por %p1057_p7, %p1056_p6 }
  0x13   :  { %p1059_p9 = pnand %p1058_p8, %p1052_p5 }
  0x15   :  { %1062 = shalt.err (!%p1059_p9)
}
  0x16   :  { %23 = dma.hbm_to_vmem [thread:$0]  %s1293_s0, 512, %s18_s18, [#allocation6], %s1111_s20, %s1111_s20, %s1112_s21  }
  0x17   :  { %s1113_s27 = smov [#allocation10]  }
  0x18   :  { %s41_s28 = sshll.u32 %s1113_s27, 4  ;;  %s42_s28 = int_to_ptr.vmem [resolvable:$true] %s41_s28 }
  0x19   :  { %s1071_s29 = scalar_lea.vmem %s42_s28, 1024  ;;  %p1076_p11 = scmp.lt.s32.totalorder %s42_s28, %s42_s28 }
  0x1a   :  { %p1072_p10 = scmp.ne.s32.totalorder %s42_s28, %s1071_s29  ;;  %p1077_p12 = scmp.lt.s32.totalorder %s1071_s29, %s1071_s29 }
  0x1c   :  { %p1078_p13 = por %p1077_p12, %p1076_p11 }
  0x1e   :  { %p1079_p0 = pnand %p1078_p13, %p1072_p10 }
  0x20   :  { %1082 = shalt.err (!%p1079_p0)
}
  0x21   :  { %47 = dma.hbm_to_vmem [thread:$0]  %s1295_s2, 1024, %s42_s28, [#allocation9], %s1111_s20, %s1111_s20, %s1112_s21  }
  0x22   :  { %1103 = dma.done.wait [#allocation6], 512  }
  0x23   :  { %1104 = vsyncadd [#allocation6], 4294966784 }
  0x24   :  { %1105 = dma.done.wait [#allocation9], 2048  }
  0x25   :  { %1106 = vsyncadd [#allocation9], 4294965248  ;;  %v1114_v0 = vmov 0.0   ;;  %vm1115_vm0 = vmmov 0   ;;  %v81_v1 = vld [vmem:[#allocation8 + $0x8] sm:$0xff]  ;;  %v83_v2 = vld [vmem:[#allocation8 + $0x18] sm:$0xff] }
  0x26   :  { %931 = vmatprep.subr.mxu0 %v1114_v0  ;;  %938 = vmatprep.subr.mxu1 %v1114_v0  ;;  %v80_v3 = vld [vmem:[#allocation8] sm:$0xff]  ;;  %v82_v4 = vld [vmem:[#allocation8 + $0x10] sm:$0xff]  ;;  %v77_v6 = vld [vmem:[#allocation5 + $0x8] sm:$0xff]  ;;  %vm63_vm1 = vcmask 7168   ;;  %v1116_v13 = vmov -inf   ;;  %vm416_vm2 = vcmask 130048  }
  0x27   :  { %935 = vmatprep.mubr.msk.f32.mxu0 %vm1115_vm0, %v1114_v0  ;;  %942 = vmatprep.mubr.msk.f32.mxu1 %vm1115_vm0, %v1114_v0  ;;  %v76_v5 = vld [vmem:[#allocation5] sm:$0xff]  ;;  %v85_v7 = vld [vmem:[#allocation8 + $0x28] sm:$0xff]  ;;  %v87_v8 = vld [vmem:[#allocation8 + $0x38] sm:$0xff]  ;;  %64 = vst.msk [vmem:[#allocation2] sm:$0xff] %vm63_vm1, %v1116_v13  ;;  %v1117_v38 = vmov 0  }
  0x28   :  { %932 = vmatpush3.xpose.msra.mxu0 %v81_v1  ;;  %939 = vmatpush3.xpose.msra.mxu1 %v83_v2  ;;  %v84_v9 = vld [vmem:[#allocation8 + $0x20] sm:$0xff]  ;;  %v86_v10 = vld [vmem:[#allocation8 + $0x30] sm:$0xff]  ;;  %v79_v12 = vld [vmem:[#allocation5 + $0x18] sm:$0xff]  ;;  %65 = vst.msk [vmem:[#allocation2 + $0x8] sm:$0xff] %vm63_vm1, %v1116_v13 }
  0x29   :  { %933 = vmatprep.subr.mxu0 %v1114_v0  ;;  %940 = vmatprep.subr.mxu1 %v1114_v0  ;;  %v78_v11 = vld [vmem:[#allocation5 + $0x10] sm:$0xff]  ;;  %66 = vst.msk [vmem:[#allocation2 + $0x10] sm:$0xff] %vm63_vm1, %v1116_v13  ;;  %67 = vst.msk [vmem:[#allocation2 + $0x18] sm:$0xff] %vm63_vm1, %v1116_v13  ;;  %v899_v16 = vld [vmem:[%s1296_s3] ss:$0 sm:$0xff] }
  0x2a   :  { %68 = vst.msk [vmem:[#allocation3] sm:$0xff] %vm63_vm1, %v1114_v0  ;;  %69 = vst.msk [vmem:[#allocation3 + $0x8] sm:$0xff] %vm63_vm1, %v1114_v0  ;;  %v900_v17 = vld [vmem:[%s1296_s3 + $0x1] ss:$0 sm:$0xff]  ;;  %v901_v28 = vld [vmem:[%s1296_s3 + $0x2] ss:$0 sm:$0xff]  ;;  %997 = vset.pattern.permute.xlu0 %v1117_v38  ;;  %998 = vset.pattern.permute.xlu1 %v1117_v38 }
  0x2b   :  { %70 = vst.msk [vmem:[#allocation3 + $0x10] sm:$0xff] %vm63_vm1, %v1114_v0  ;;  %71 = vst.msk [vmem:[#allocation3 + $0x18] sm:$0xff] %vm63_vm1, %v1114_v0  ;;  %v902_v29 = vld [vmem:[%s1296_s3 + $0x3] ss:$0 sm:$0xff]  ;;  %v89_v54 = vld [vmem:[#allocation10 + $0x8] sm:$0xff]  ;;  %s1118_s3 = smov [#allocation11]  }
  0x2c   :  { %934 = vmatpush3.xpose.msra.mxu0 %v80_v3  ;;  %941 = vmatpush3.xpose.msra.mxu1 %v82_v4  ;;  %v88_v56 = vld [vmem:[#allocation10] sm:$0xff]  ;;  %v91_v57 = vld [vmem:[#allocation10 + $0x18] sm:$0xff]  ;;  %v90_v58 = vld [vmem:[#allocation10 + $0x10] sm:$0xff]  ;;  %s886_s11 = sshll.u32 %s1118_s3, 4  ;;  %s887_s11 = int_to_ptr.vmem [resolvable:$true] %s886_s11 }
  0x2d   :  { %945 = vmatprep.subr.mxu0 %v1114_v0  ;;  %952 = vmatprep.subr.mxu1 %v1114_v0  ;;  %s1083_s12 = scalar_lea.vmem %s887_s11, 512  ;;  %p1088_p2 = scmp.lt.s32.totalorder %s887_s11, %s887_s11 }
  0x2e   :  { %v1215_v39 = vld [vmem:[#allocation2] sm:$0xff]  ;;  %p1084_p1 = scmp.ne.s32.totalorder %s887_s11, %s1083_s12  ;;  %p1089_p3 = scmp.lt.s32.totalorder %s1083_s12, %s1083_s12 }
  0x2f   :  { %936 = vmatmul.mubr.f32.vlgmr.msra.gmra.mxu0 %v76_v5  ;;  %943 = vmatmul.mubr.f32.vlgmr.msra.gmra.mxu1 %v77_v6  ;;  %v1220_v42 = vld [vmem:[#allocation2 + $0x8] sm:$0xff] }
  0x30   :  { %946 = vmatpush3.xpose.msra.mxu0 %v85_v7  ;;  %953 = vmatpush3.xpose.msra.mxu1 %v87_v8  ;;  %v1230_v46 = vld [vmem:[#allocation2 + $0x10] sm:$0xff]  ;;  %v1240_v50 = vld [vmem:[#allocation2 + $0x18] sm:$0xff]  ;;  %v93_v8 = vld [vmem:[#allocation10 + $0x28] sm:$0xff]  ;;  %p1090_p4 = por %p1089_p3, %p1088_p2 }
  0x31   :  { %947 = vmatprep.subr.mxu0 %v1114_v0  ;;  %954 = vmatprep.subr.mxu1 %v1114_v0 }
  0x32   :  { %949 = vmatprep.mubr.msk.f32.mxu0 %vm1115_vm0, %v1114_v0  ;;  %956 = vmatprep.mubr.msk.f32.mxu1 %vm1115_vm0, %v1114_v0  ;;  %v480_v38 = vld [vmem:[#allocation3 + $0x18] sm:$0xff]  ;;  %p1091_p5 = pnand %p1090_p4, %p1084_p1 }
  0x34   :  { %948 = vmatpush3.xpose.msra.mxu0 %v84_v9  ;;  %955 = vmatpush3.xpose.msra.mxu1 %v86_v10 }
  0x35   :  { %959 = vmatprep.subr.mxu0 %v1114_v0  ;;  %966 = vmatprep.subr.mxu1 %v1114_v0 }
  0x37   :  { %950 = vmatmul.mubr.f32.vlgmr.msra.gmra.mxu0 %v78_v11  ;;  %957 = vmatmul.mubr.f32.vlgmr.msra.gmra.mxu1 %v79_v12  ;;  %v92_v11 = vld [vmem:[#allocation10 + $0x20] sm:$0xff]  ;;  %v95_v12 = vld [vmem:[#allocation10 + $0x38] sm:$0xff] }
  0x38   :  { %963 = vmatprep.mubr.msk.f32.mxu0 %vm1115_vm0, %v1114_v0  ;;  %970 = vmatprep.mubr.msk.f32.mxu1 %vm1115_vm0, %v1114_v0 }
  0x39   :  { %960 = vmatpush3.msra.mxu0 %v89_v54  ;;  %967 = vmatpush3.msra.mxu1 %v91_v57 }
  0x3a   :  { %961 = vmatprep.subr.mxu0 %v1114_v0  ;;  %968 = vmatprep.subr.mxu1 %v1114_v0 }
  0x3b   :  { %962 = vmatpush3.msra.mxu0 %v88_v56  ;;  %969 = vmatpush3.msra.mxu1 %v90_v58 }
  0x3c   :  { %973 = vmatprep.subr.mxu0 %v1114_v0  ;;  %980 = vmatprep.subr.mxu1 %v1114_v0 }
  0xef   :  { %v162_v14 = vpop.f32.mrf.mxu0  ;;  %v232_v15 = vpop.f32.mrf.mxu1 }
  0xf0   :  { %v376_v18 = vmul.f32 0.088388346, %v162_v14  ;;  %v377_v19 = vmul.f32 0.088388346, %v232_v15  ;;  %v94_v15 = vld [vmem:[#allocation10 + $0x30] sm:$0xff] }
  0xf1   :  { %v937_v20 = vpop.f32.mrf.mxu0  ;;  %v944_v21 = vpop.f32.mrf.mxu1 }
  0xf2   :  { %v408_v22 = vadd.f32 %v899_v16, %v376_v18  ;;  %v1202_v23 = vadd.f32 %v900_v17, %v377_v19 }
  0xf4   :  { %v417_v24 = vsel %vm416_vm2, %v408_v22, -inf  ;;  %v420_v25 = vsel %vm416_vm2, %v1202_v23, -inf }
  0xf5   :  { %418 = vmax.xlane.f32.xlu0 %v417_v24  ;;  %v477_v24 = vld [vmem:[#allocation3] sm:$0xff] }
  0xf7   :  { %v302_v26 = vpop.f32.mrf.mxu0  ;;  %v372_v27 = vpop.f32.mrf.mxu1 }
  0xf8   :  { %v378_v30 = vmul.f32 0.088388346, %v302_v26  ;;  %v379_v31 = vmul.f32 0.088388346, %v372_v27 }
  0xf9   :  { %421 = vmax.xlane.f32.xlu0 %v420_v25  ;;  %v951_v32 = vpop.f32.mrf.mxu0  ;;  %v958_v33 = vpop.f32.mrf.mxu1 }
  0xfa   :  { %v410_v34 = vadd.f32 %v901_v28, %v378_v30  ;;  %v411_v35 = vadd.f32 %v902_v29, %v379_v31  ;;  %v478_v28 = vld [vmem:[#allocation3 + $0x8] sm:$0xff]  ;;  %v479_v33 = vld [vmem:[#allocation3 + $0x10] sm:$0xff] }
  0xfc   :  { %v423_v36 = vsel %vm416_vm2, %v410_v34, -inf  ;;  %v426_v37 = vsel %vm416_vm2, %v411_v35, -inf }
  0xfd   :  { %424 = vmax.xlane.f32.xlu1 %v423_v36 }
 0x101   :  { %427 = vmax.xlane.f32.xlu1 %v426_v37 }
 0x17e   :  { %v419_v40 = vpop.xlane.xlu0 %418 }
 0x17f   :  { %v1218_v41 = vmax.f32 %v1215_v39, %v419_v40 }
 0x181   :  { %v433_v43 = vsub.f32 %v1215_v39, %v1218_v41  ;;  %834 = vst.msk [vmem:[#allocation2] sm:$0xff] %vm63_vm1, %v1218_v41  ;;  %447 = vperm.xlu0 %997, %v1218_v41  }
 0x182   :  { %v422_v44 = vpop.xlane.xlu0 %421 }
 0x183   :  { %v1228_v45 = vmax.f32 %v1220_v42, %v422_v44  ;;  %v437_v20 = vmul.f32 1.442695, %v433_v43 }
 0x185   :  { %v434_v47 = vsub.f32 %v1220_v42, %v1228_v45  ;;  %835 = vst.msk [vmem:[#allocation2 + $0x8] sm:$0xff] %vm63_vm1, %v1228_v45  ;;  %452 = vperm.xlu1 %998, %v1228_v45  }
 0x186   :  { %v425_v48 = vpop.xlane.xlu1 %424 }
 0x187   :  { %v1238_v49 = vmax.f32 %v1230_v46, %v425_v48 }
 0x189   :  { %v435_v51 = vsub.f32 %v1230_v46, %v1238_v49  ;;  %836 = vst.msk [vmem:[#allocation2 + $0x10] sm:$0xff] %vm63_vm1, %v1238_v49  ;;  %457 = vperm.xlu1 %998, %v1238_v49  }
 0x18a   :  { %v428_v52 = vpop.xlane.xlu1 %427 }
 0x18b   :  { %v1248_v53 = vmax.f32 %v1240_v50, %v428_v52  ;;  %v441_v21 = vmul.f32 1.442695, %v435_v51 }
 0x18d   :  { %v436_v55 = vsub.f32 %v1240_v50, %v1248_v53  ;;  %837 = vst.msk [vmem:[#allocation2 + $0x18] sm:$0xff] %vm63_vm1, %v1248_v53  ;;  %462 = vperm.xlu1 %998, %v1248_v53  }
 0x1fc   :  { %v448_v59 = vpop.permute.xlu0 %447 }
 0x1fd   :  { %v465_v60 = vsub.f32 %v408_v22, %v448_v59  ;;  %v443_v22 = vmul.f32 1.442695, %v436_v55 }
 0x1ff   :  { %v469_v61 = vmul.f32 1.442695, %v465_v60 }
 0x200   :  { %v453_v62 = vpop.permute.xlu1 %452 }
 0x201   :  { %999 = vpow2.f32 %v469_v61  ;;  %v466_v63 = vsub.f32 %v1202_v23, %v453_v62 }
 0x203   :  { %v471_v1 = vmul.f32 1.442695, %v466_v63 }
 0x204   :  { %v458_v2 = vpop.permute.xlu1 %457 }
 0x205   :  { %1001 = vpow2.f32 %v471_v1  ;;  %v467_v3 = vsub.f32 %v410_v34, %v458_v2 }
 0x207   :  { %v473_v4 = vmul.f32 1.442695, %v467_v3 }
 0x208   :  { %v463_v5 = vpop.permute.xlu1 %462 }
 0x209   :  { %1003 = vpow2.f32 %v473_v4  ;;  %v468_v6 = vsub.f32 %v411_v35, %v463_v5 }
 0x20b   :  { %v475_v7 = vmul.f32 1.442695, %v468_v6 }
 0x20d   :  { %1005 = vpow2.f32 %v475_v7 }
 0x20e   :  { %v1000_v9 = vpop.eup %999  ;;  %1007 = vpow2.f32 %v437_v20 }
 0x20f   :  { %964 = vmatmul.mubr.msk.f32.vlgmr.msra.gmra.mxu0 %vm416_vm2, %v1000_v9  ;;  %v485_v10 = vsel %vm416_vm2, %v1000_v9, 0.0 }
 0x210   :  { %486 = vadd.xlane.f32.xlu1 %v485_v10  ;;  %974 = vmatpush3.msra.mxu0 %v93_v8 }
 0x211   :  { %975 = vmatprep.subr.mxu0 %v1114_v0  ;;  %977 = vmatprep.mubr.msk.f32.mxu0 %vm1115_vm0, %v1114_v0 }
 0x212   :  { %v1002_v13 = vpop.eup %1001  ;;  %976 = vmatpush3.msra.mxu0 %v92_v11 }
 0x213   :  { %971 = vmatmul.mubr.msk.f32.vlgmr.msra.gmra.mxu1 %vm416_vm2, %v1002_v13  ;;  %v488_v14 = vsel %vm416_vm2, %v1002_v13, 0.0 }
 0x214   :  { %489 = vadd.xlane.f32.xlu0 %v488_v14  ;;  %981 = vmatpush3.msra.mxu1 %v95_v12 }
 0x215   :  { %982 = vmatprep.subr.mxu1 %v1114_v0  ;;  %984 = vmatprep.mubr.msk.f32.mxu1 %vm1115_vm0, %v1114_v0  ;;  %v439_v0 = vmul.f32 1.442695, %v434_v47 }
 0x216   :  { %v1004_v16 = vpop.eup %1003  ;;  %983 = vmatpush3.msra.mxu1 %v94_v15 }
 0x217   :  { %978 = vmatmul.mubr.msk.f32.vlgmr.msra.gmra.mxu0 %vm416_vm2, %v1004_v16  ;;  %v491_v17 = vsel %vm416_vm2, %v1004_v16, 0.0  ;;  %1009 = vpow2.f32 %v439_v0 }
 0x218   :  { %492 = vadd.xlane.f32.xlu1 %v491_v17  ;;  %1011 = vpow2.f32 %v441_v21 }
 0x219   :  { %1013 = vpow2.f32 %v443_v22 }
 0x21a   :  { %v1006_v18 = vpop.eup %1005 }
 0x21b   :  { %985 = vmatmul.mubr.msk.f32.vlgmr.msra.gmra.mxu1 %vm416_vm2, %v1006_v18  ;;  %v494_v19 = vsel %vm416_vm2, %v1006_v18, 0.0  ;;  %v1008_v23 = vpop.eup %1007 }
 0x21c   :  { %495 = vadd.xlane.f32.xlu1 %v494_v19  ;;  %v481_v25 = vmul.f32 %v1008_v23, %v477_v24 }
 0x224   :  { %v1010_v26 = vpop.eup %1009 }
 0x225   :  { %v482_v30 = vmul.f32 %v1010_v26, %v478_v28  ;;  %v1012_v31 = vpop.eup %1011 }
 0x226   :  { %v483_v35 = vmul.f32 %v1012_v31, %v479_v33  ;;  %v1014_v36 = vpop.eup %1013 }
 0x227   :  { %v484_v41 = vmul.f32 %v1014_v36, %v480_v38 }
 0x299   :  { %v487_v27 = vpop.xlane.xlu1 %486 }
 0x29a   :  { %v497_v29 = vadd.f32 %v487_v27, %v481_v25 }
 0x29c   :  { %502 = vst.msk [vmem:[#allocation3] sm:$0xff] %vm63_vm1, %v497_v29 }
 0x29d   :  { %v490_v32 = vpop.xlane.xlu0 %489 }
 0x29e   :  { %v498_v34 = vadd.f32 %v490_v32, %v482_v30 }
 0x2a0   :  { %503 = vst.msk [vmem:[#allocation3 + $0x8] sm:$0xff] %vm63_vm1, %v498_v34 }
 0x2a1   :  { %v493_v37 = vpop.xlane.xlu1 %492 }
 0x2a2   :  { %v499_v39 = vadd.f32 %v493_v37, %v483_v35 }
 0x2a3   :  { %v845_v40 = vld [vmem:[#allocation3] sm:$0xff] }
 0x2a4   :  { %504 = vst.msk [vmem:[#allocation3 + $0x10] sm:$0xff] %vm63_vm1, %v499_v39  ;;  %851 = vperm.xlu1 %998, %v845_v40  }
 0x2a5   :  { %v496_v42 = vpop.xlane.xlu1 %495 }
 0x2a6   :  { %v500_v43 = vadd.f32 %v496_v42, %v484_v41 }
 0x2a7   :  { %v846_v44 = vld [vmem:[#allocation3 + $0x8] sm:$0xff] }
 0x2a8   :  { %505 = vst.msk [vmem:[#allocation3 + $0x18] sm:$0xff] %vm63_vm1, %v500_v43  ;;  %856 = vperm.xlu0 %997, %v846_v44  }
 0x2ab   :  { %v847_v45 = vld [vmem:[#allocation3 + $0x10] sm:$0xff] }
 0x2ac   :  { %517 = vperm.xlu0 %997, %v1010_v26   ;;  %861 = vperm.xlu1 %998, %v847_v45  }
 0x2af   :  { %v848_v46 = vld [vmem:[#allocation3 + $0x18] sm:$0xff] }
 0x2b0   :  { %527 = vperm.xlu0 %997, %v1014_v36   ;;  %866 = vperm.xlu1 %998, %v848_v46  }
 0x2b4   :  { %512 = vperm.xlu1 %998, %v1008_v23  }
 0x2b8   :  { %522 = vperm.xlu1 %998, %v1012_v31  }
 0x2cf   :  { %v603_v47 = vpop.f32.mrf.mxu0 }
 0x2d1   :  { %v965_v48 = vpop.f32.mrf.mxu0 }
 0x2d3   :  { %v676_v49 = vpop.f32.mrf.mxu1 }
 0x2d5   :  { %v972_v50 = vpop.f32.mrf.mxu1 }
 0x2d7   :  { %v749_v51 = vpop.f32.mrf.mxu0 }
 0x2d9   :  { %v979_v52 = vpop.f32.mrf.mxu0 }
 0x2db   :  { %v822_v53 = vpop.f32.mrf.mxu1 }
 0x2dd   :  { %v986_v54 = vpop.f32.mrf.mxu1 }
 0x31f   :  { %v852_v55 = vpop.permute.xlu1 %851 }
 0x323   :  { %v857_v56 = vpop.permute.xlu0 %856 }
 0x324   :  { %1015 = vrcp.f32 %v857_v56 }
 0x325   :  { %1017 = vrcp.f32 %v852_v55 }
 0x327   :  { %v862_v57 = vpop.permute.xlu1 %861  ;;  %v518_v58 = vpop.permute.xlu0 %517 }
 0x328   :  { %1019 = vrcp.f32 %v862_v57  ;;  %v531_v60 = vmul.f32 0.0, %v518_v58 }
 0x32a   :  { %v827_v62 = vadd.f32 %v676_v49, %v531_v60 }
 0x32b   :  { %v867_v59 = vpop.permute.xlu1 %866  ;;  %v528_v2 = vpop.permute.xlu0 %527 }
 0x32c   :  { %1021 = vrcp.f32 %v867_v59  ;;  %v533_v7 = vmul.f32 0.0, %v528_v2 }
 0x32e   :  { %v829_v12 = vadd.f32 %v822_v53, %v533_v7 }
 0x32f   :  { %v513_v61 = vpop.permute.xlu1 %512 }
 0x330   :  { %v530_v63 = vmul.f32 0.0, %v513_v61 }
 0x331   :  { %v1016_v1 = vpop.eup %1015 }
 0x332   :  { %v872_v3 = vmul.f32 %v1016_v1, %v827_v62  ;;  %v826_v4 = vadd.f32 %v603_v47, %v530_v63  ;;  %v1018_v5 = vpop.eup %1017 }
 0x333   :  { %v523_v6 = vpop.permute.xlu1 %522 }
 0x334   :  { %878 = vst [vmem:[#allocation11 + $0x8] sm:$0xff] %v872_v3  ;;  %v870_v8 = vmul.f32 %v1018_v5, %v826_v4  ;;  %v532_v9 = vmul.f32 0.0, %v523_v6 }
 0x335   :  { %v1020_v11 = vpop.eup %1019 }
 0x336   :  { %877 = vst [vmem:[#allocation11] sm:$0xff] %v870_v8  ;;  %v828_v10 = vadd.f32 %v749_v51, %v532_v9 }
 0x338   :  { %v874_v13 = vmul.f32 %v1020_v11, %v828_v10 }
 0x339   :  { %v1022_v14 = vpop.eup %1021 }
 0x33a   :  { %879 = vst [vmem:[#allocation11 + $0x10] sm:$0xff] %v874_v13  ;;  %v876_v15 = vmul.f32 %v1022_v14, %v829_v12 }
 0x33c   :  { %880 = vst [vmem:[#allocation11 + $0x18] sm:$0xff] %v876_v15 }
 0x33d   :  { %1094 = shalt.err (!%p1091_p5)
}
 0x33e   :  { %892 = dma.vmem_to_hbm [thread:$0]  %s887_s11, 512, %s1297_s4, [#allocation7], %s1111_s20, %s1111_s20, %s1112_s21  }
 0x33f   :  { %1107 = dma.done.wait [#allocation7], 512  }
 0x340   :  { %1108 = vsyncadd [#allocation7], 4294966784 }
 0x341   :  { %896 = vsyncpa [#allocation6], 1 }
 0x342   :  { %897 = vsyncpa [#allocation9], 1 }
 0x343   :  { %898 = vsyncpa [#allocation7], 1 }

</bundles_post_ra>
